<compile_context>
chip_gen: v5e
topology: v5e:2x2
jax: 0.10.0
libtpu: 0.0.40
codegen_flags: <defaults>
</compile_context>

<pallas_src>
import numpy as np
import jax
import jax.numpy as jnp
from jax.experimental import pallas as pl
from jax.experimental.pallas import tpu as pltpu

SIZES = (1, 2, 3, 6)
TILE_MAX = 16384            # >> 0.35 us/step overhead; fits v7x 64 MiB VMEM


def _round_up(x, m):
    return ((x + m - 1) // m) * m


def _cdiv(a, b):
    return -(-a // b)


# ---------------------------------------------------------------------------
# Glue helpers: adaptive avg-pool / bilinear upsample as small matrices
# ---------------------------------------------------------------------------
def adaptive_pool_matrix(in_size: int, out_size: int) -> np.ndarray:
    """Row-stochastic M (out, in) s.t. pooled = M @ x (AdaptiveAvgPool2d)."""
    M = np.zeros((out_size, in_size), dtype=np.float32)
    for j in range(out_size):
        start = (j * in_size) // out_size
        end = -((-(j + 1) * in_size) // out_size)
        M[j, start:end] = 1.0 / (end - start)
    return M


def bilinear_upsample_matrix(in_size: int, out_size: int) -> np.ndarray:
    """U (out, in) s.t. up = U @ x (bilinear, align_corners=False)."""
    U = np.zeros((out_size, in_size), dtype=np.float32)
    if in_size == 1:
        U[:, 0] = 1.0
        return U
    scale = in_size / out_size
    for y in range(out_size):
        src = (y + 0.5) * scale - 0.5
        src = min(max(src, 0.0), in_size - 1)
        i0 = int(np.floor(src))
        i1 = min(i0 + 1, in_size - 1)
        frac = src - i0
        U[y, i0] += 1.0 - frac
        U[y, i1] += frac
    return U


# ---------------------------------------------------------------------------
# Pallas kernel: fused weight-net + weighted combine + bottleneck + ReLU
# ---------------------------------------------------------------------------
def ctx_kernel(f_ref, ms_ref, wwP_ref, bwP_ref, wb_ref, bb_ref, out_ref):
    C, T = f_ref.shape
    S = len(SIZES)

    f = f_ref[...]                                     # (C, T) f32 stream
    msP = ms_ref[...].astype(jnp.float32)              # (S*C, T) f32 (dense vregs)

    # Per-scale gates on the packed (S*C, T) block:
    #   diff = feats - ms ; logit = block_diag(ww,...) @ diff + bias ; sigmoid
    fP = jnp.concatenate([f] * S, axis=0)              # (S*C, T)
    diffP = (fP - msP).astype(jnp.bfloat16)            # bf16 MXU operand
    logitP = jnp.dot(wwP_ref[...], diffP, preferred_element_type=jnp.float32)
    logitP = logitP + jnp.broadcast_to(bwP_ref[...], logitP.shape)
    wP = jax.nn.sigmoid(logitP)                        # (S*C, T), EUP

    numP = msP * wP                                    # (S*C, T)
    num = numP[0:C]
    den = wP[0:C]
    for i in range(1, S):
        num = num + numP[i * C:(i + 1) * C]
        den = den + wP[i * C:(i + 1) * C]

    # den = sum of sigmoids > 0; +eps guards underflow before approx recip.
    overall = num * pl.reciprocal(den + 1e-6, approx=True)    # (C, T) f32

    # bottleneck(concat([overall, feats])): one (F, 2C) @ (2C, T) MXU dot.
    x2 = jnp.concatenate([overall, f], axis=0).astype(jnp.bfloat16)   # (2C, T)
    acc = jnp.dot(wb_ref[...], x2, preferred_element_type=jnp.float32)
    acc = acc + jnp.broadcast_to(bb_ref[...], acc.shape)
    out_ref[...] = jnp.maximum(acc, 0.0).astype(out_ref.dtype)


def _vmem_budget_bytes(C, F_out, tile):
    S = len(SIZES)
    # double-buffered I/O streams: feats f32, packed ms bf16, out bf16
    streams = 2 * (C * 4 + S * C * 2 + F_out * 2) * tile
    # compiler-managed temps: fP/msP/logitP/wP/numP f32 + diffP bf16 (+ misc)
    temps = (S * C) * 24 * tile + (2 * F_out + 8 * C) * 4 * tile
    est = streams + temps + (8 << 20)                  # headroom
    return int(max(16 << 20, min(est, 48 << 20)))      # cap: fits v7x 64 MiB


def fused_contextual_kernel(feats_p, ms_packed, wwP, bwP, wb, bb, *, tile):
    """feats_p: (N,C,HWp) f32, ms_packed: (N,4C,HWp) bf16 -> (N,F,HWp) bf16."""
    N, C, HWp = feats_p.shape
    SC = ms_packed.shape[1]
    F_out = wb.shape[0]
    assert HWp % tile == 0

    f_spec = pl.BlockSpec((None, C, tile), lambda n, t: (n, 0, t))
    ms_spec = pl.BlockSpec((None, SC, tile), lambda n, t: (n, 0, t))
    out_spec = pl.BlockSpec((None, F_out, tile), lambda n, t: (n, 0, t))
    full = lambda shape: pl.BlockSpec(shape, lambda n, t: (0, 0))

    return pl.pallas_call(
        ctx_kernel,
        out_shape=jax.ShapeDtypeStruct((N, F_out, HWp), jnp.bfloat16),
        grid_spec=pltpu.PrefetchScalarGridSpec(
            num_scalar_prefetch=0,
            grid=(N, HWp // tile),
            in_specs=[f_spec, ms_spec,
                      full(wwP.shape), full(bwP.shape),
                      full(wb.shape), full(bb.shape)],
            out_specs=out_spec,
        ),
        compiler_params=pltpu.CompilerParams(
            dimension_semantics=("parallel", "parallel"),
            vmem_limit_bytes=_vmem_budget_bytes(C, F_out, tile)),
    )(feats_p, ms_packed, wwP, bwP, wb, bb)


# ---------------------------------------------------------------------------
# Full module forward (glue + kernel)
# ---------------------------------------------------------------------------
def init_params(key, features, out_features):
    ks = jax.random.split(key, 4 + len(SIZES))
    p = {}
    p["scale_w"] = [0.3 * jax.random.normal(ks[i], (features, features), jnp.float32)
                    for i in range(len(SIZES))]                       # 1x1 conv, no bias
    p["weight_net_w"] = 0.3 * jax.random.normal(ks[4], (features, features), jnp.float32)
    p["weight_net_b"] = 0.1 * jax.random.normal(ks[5], (features,), jnp.float32)
    p["bottleneck_w"] = 0.3 * jax.random.normal(
        ks[6], (out_features, 2 * features), jnp.float32)             # (F, 2C)
    p["bottleneck_b"] = 0.1 * jax.random.normal(ks[7], (out_features,), jnp.float32)
    return p


def multi_scale_features(feats, params):
    """Plain-JAX glue: adaptive avg pool -> per-scale 1x1 conv -> bilinear up."""
    N, C, H, W = feats.shape
    out = []
    for i, s in enumerate(SIZES):
        Ah = jnp.asarray(adaptive_pool_matrix(H, s))        # (s, H)
        Aw = jnp.asarray(adaptive_pool_matrix(W, s))        # (s, W)
        Uh = jnp.asarray(bilinear_upsample_matrix(s, H))    # (H, s)
        Uw = jnp.asarray(bilinear_upsample_matrix(s, W))    # (W, s)
        pooled = jnp.einsum("nchw,ih,jw->ncij", feats, Ah, Aw)
        conved = jnp.einsum("ncij,oc->noij", pooled, params["scale_w"][i])
        up = jnp.einsum("noij,hi,wj->nohw", conved, Uh, Uw)
        out.append(up)
    return out


def _choose_tile(HW, N):
    """Near-divisor, lane-aligned pixel tile; keep >= 2 grid steps for v7x."""
    n_t = max(1, _cdiv(HW, TILE_MAX))
    if N == 1 and n_t == 1 and HW > 256:
        n_t = 2                         # feed both v7x TensorCores
    tile = _round_up(_cdiv(HW, n_t), 128)
    return tile, n_t * tile


def contextual_module_forward(feats, params, *, out_dtype=jnp.bfloat16):
    """feats: (N, C, H, W) f32 -> (N, out_features, H, W) out_dtype."""
    N, C, H, W = feats.shape
    HW = H * W
    tile, HWp = _choose_tile(HW, N)

    # Multi-scale maps emitted directly in the packed / padded / bf16 layout
    # the kernel consumes (under jit the cast/pad fuses into the upsample).
    ms = multi_scale_features(feats, params)                  # 4 x (N,C,H,W) f32
    ms_flat = jnp.concatenate([m.reshape(N, C, HW) for m in ms], axis=1)
    feats_flat = feats.reshape(N, C, HW)
    if HWp != HW:
        pad = ((0, 0), (0, 0), (0, HWp - HW))
        ms_flat = jnp.pad(ms_flat, pad)
        feats_flat = jnp.pad(feats_flat, pad)
    ms_packed = ms_flat.astype(jnp.bfloat16)                  # (N, 4C, HWp)
    feats_p = feats_flat.astype(jnp.float32)                  # (N, C, HWp)

    S = len(SIZES)
    ww = params["weight_net_w"]                                           # (C, C)
    wwP = jnp.kron(jnp.eye(S, dtype=ww.dtype), ww).astype(jnp.bfloat16)   # (4C,4C)
    bwP = jnp.tile(params["weight_net_b"], S).reshape(S * C, 1).astype(jnp.float32)
    wb = params["bottleneck_w"].astype(jnp.bfloat16)                      # (F, 2C)
    F_out = wb.shape[0]
    bb = params["bottleneck_b"].reshape(F_out, 1).astype(jnp.float32)

    out_p = fused_contextual_kernel(feats_p, ms_packed, wwP, bwP, wb, bb,
                                    tile=tile)                 # (N, F, HWp) bf16
    if HWp != HW:
        out_p = out_p[..., :HW]
    return out_p.reshape(N, F_out, H, W).astype(out_dtype)


# ---------------------------------------------------------------------------
# Pure-JAX reference (mirrors the PyTorch forward) for correctness checks
# ---------------------------------------------------------------------------
def reference_forward(feats, params, mirror_kernel_precision=False):
    ms = multi_scale_features(feats, params)           # f32 glue, same as kernel
    ww, bw = params["weight_net_w"], params["weight_net_b"]
    wb, bb = params["bottleneck_w"], params["bottleneck_b"]
    q = lambda x: x.astype(jnp.bfloat16).astype(jnp.float32)
    if mirror_kernel_precision:
        ms = [q(m) for m in ms]                        # bf16 ms stream
        ww, wb = q(ww), q(wb)                          # bf16 matmul weights
    diffs = [feats - m for m in ms]
    if mirror_kernel_precision:
        diffs = [q(d) for d in diffs]                  # bf16 weight-net operand
    weights = [jax.nn.sigmoid(
        jnp.einsum("nchw,oc->nohw", d, ww) + bw[None, :, None, None]) for d in diffs]
    num = sum(m * w for m, w in zip(ms, weights))
    den = sum(weights)
    overall = num / (den + 1e-6) if mirror_kernel_precision else num / den
    cat = jnp.concatenate([overall, feats], axis=1)
    if mirror_kernel_precision:
        cat = q(cat)                                   # bf16 bottleneck operand
    bottle = jnp.einsum("nchw,oc->nohw", cat, wb) + bb[None, :, None, None]
    out = jnp.maximum(bottle, 0.0)
    if mirror_kernel_precision:
        out = out.astype(jnp.bfloat16)                 # bf16 output store
    return out


# ---------------------------------------------------------------------------
if __name__ == "__main__":
    key = jax.random.PRNGKey(0)
    k_x, k_p = jax.random.split(key)

    N, C, H, W = 2, 4, 16, 16            # features=C, out_features=32
    OUT_FEATURES = 32

    feats = jax.random.normal(k_x, (N, C, H, W), jnp.float32)
    params = init_params(k_p, C, OUT_FEATURES)

    fwd = jax.jit(lambda x: contextual_module_forward(x, params))
    out = jax.block_until_ready(fwd(feats))
    assert out.shape == (N, OUT_FEATURES, H, W), out.shape
    out_f32 = np.asarray(out.astype(jnp.float32))

    # 1) Tight check against a reference that mirrors the kernel's bf16
    #    stream / operand / output precision policy (validates kernel logic).
    ref_q = jax.block_until_ready(
        reference_forward(feats, params, mirror_kernel_precision=True))
    np.testing.assert_allclose(out_f32, np.asarray(ref_q.astype(jnp.float32)),
                               rtol=3e-2, atol=3e-2)

    # 2) Looser end-to-end check against the full-f32 reference (bf16 ms
    #    streams + bf16 output quantize the result, hence wider tolerance).
    ref = jax.block_until_ready(reference_forward(feats, params))
    np.testing.assert_allclose(out_f32, np.asarray(ref.astype(jnp.float32)),
                               rtol=1e-1, atol=1e-1)

    print("KERNEL_OK")
</pallas_src>

<mosaic_0001>
module attributes {stable_mosaic.version = 11 : i64} {
  func.func @ctx_kernel(%arg0: i32, %arg1: i32, %arg2: memref<1x4x256xf32, #tpu.memory_space<vmem>>, %arg3: memref<1x16x256xbf16, #tpu.memory_space<vmem>>, %arg4: memref<16x16xbf16, #tpu.memory_space<vmem>>, %arg5: memref<16x1xf32, #tpu.memory_space<vmem>>, %arg6: memref<32x8xbf16, #tpu.memory_space<vmem>>, %arg7: memref<32x1xf32, #tpu.memory_space<vmem>>, %arg8: memref<1x32x256xbf16, #tpu.memory_space<vmem>>) attributes {dimension_semantics = [#tpu.dimension_semantics<parallel>, #tpu.dimension_semantics<parallel>], iteration_bounds = array<i64: 2, 1>, scalar_prefetch = 0 : i64, scratch_operands = 0 : i64, tpu.core_type = #tpu.core_type<tc>, window_params = [{transform_indices = @transform_0, window_bounds = array<i64: 1, 4, 256>}, {transform_indices = @transform_1, window_bounds = array<i64: 1, 16, 256>}, {pipeline_mode = #tpu.pipeline_mode<synchronous>, transform_indices = @transform_2, window_bounds = array<i64: 16, 16>}, {pipeline_mode = #tpu.pipeline_mode<synchronous>, transform_indices = @transform_3, window_bounds = array<i64: 16, 1>}, {pipeline_mode = #tpu.pipeline_mode<synchronous>, transform_indices = @transform_4, window_bounds = array<i64: 32, 8>}, {pipeline_mode = #tpu.pipeline_mode<synchronous>, transform_indices = @transform_5, window_bounds = array<i64: 32, 1>}, {transform_indices = @transform_6, window_bounds = array<i64: 1, 32, 256>}]} {
    %c0 = arith.constant 0 : index
    %c0_0 = arith.constant 0 : index
    %c0_1 = arith.constant 0 : index
    %0 = vector.load %arg2[%c0, %c0_0, %c0_1] : memref<1x4x256xf32, #tpu.memory_space<vmem>>, vector<1x4x256xf32>
    %1 = vector.shape_cast %0 : vector<1x4x256xf32> to vector<4x256xf32>
    %c0_2 = arith.constant 0 : index
    %c0_3 = arith.constant 0 : index
    %c0_4 = arith.constant 0 : index
    %2 = vector.load %arg3[%c0_2, %c0_3, %c0_4] : memref<1x16x256xbf16, #tpu.memory_space<vmem>>, vector<1x16x256xbf16>
    %3 = vector.shape_cast %2 : vector<1x16x256xbf16> to vector<16x256xbf16>
    %4 = arith.extf %3 : vector<16x256xbf16> to vector<16x256xf32>
    %5 = tpu.concatenate %1, %1, %1, %1 in 0 : vector<4x256xf32>, vector<4x256xf32>, vector<4x256xf32>, vector<4x256xf32> -> vector<16x256xf32>
    %6 = arith.subf %5, %4 : vector<16x256xf32>
    %7 = arith.truncf %6 : vector<16x256xf32> to vector<16x256xbf16>
    %c0_5 = arith.constant 0 : index
    %c0_6 = arith.constant 0 : index
    %8 = vector.load %arg4[%c0_5, %c0_6] : memref<16x16xbf16, #tpu.memory_space<vmem>>, vector<16x16xbf16>
    %cst = arith.constant dense<0.000000e+00> : vector<16x256xf32>
    %9 = tpu.matmul %8, %7, %cst {dimension_numbers = #tpu.dot_dimension_numbers<[1], [0], [0], [1], [0, 0, 1, 1], [], []>} : vector<16x16xbf16>, vector<16x256xbf16>, vector<16x256xf32> -> vector<16x256xf32>
    %c0_7 = arith.constant 0 : index
    %c0_8 = arith.constant 0 : index
    %10 = vector.load %arg5[%c0_7, %c0_8] : memref<16x1xf32, #tpu.memory_space<vmem>>, vector<16x1xf32>
    %11 = vector.shape_cast %10 : vector<16x1xf32> to vector<16x1xf32>
    %12 = vector.broadcast %11 : vector<16x1xf32> to vector<16x256xf32>
    %13 = arith.addf %9, %12 : vector<16x256xf32>
    %14 = arith.negf %13 : vector<16x256xf32>
    %15 = math.exp %14 : vector<16x256xf32>
    %cst_9 = arith.constant 1.000000e+00 : f32
    %16 = vector.broadcast %cst_9 : f32 to vector<16x256xf32>
    %17 = arith.addf %16, %15 : vector<16x256xf32>
    %18 = arith.divf %16, %17 : vector<16x256xf32>
    %19 = arith.mulf %4, %18 : vector<16x256xf32>
    %20 = vector.extract_strided_slice %19 {offsets = [0, 0], sizes = [4, 256], strides = [1, 1]} : vector<16x256xf32> to vector<4x256xf32>
    %21 = vector.extract_strided_slice %18 {offsets = [0, 0], sizes = [4, 256], strides = [1, 1]} : vector<16x256xf32> to vector<4x256xf32>
    %22 = vector.extract_strided_slice %19 {offsets = [4, 0], sizes = [4, 256], strides = [1, 1]} : vector<16x256xf32> to vector<4x256xf32>
    %23 = arith.addf %20, %22 : vector<4x256xf32>
    %24 = vector.extract_strided_slice %18 {offsets = [4, 0], sizes = [4, 256], strides = [1, 1]} : vector<16x256xf32> to vector<4x256xf32>
    %25 = arith.addf %21, %24 : vector<4x256xf32>
    %26 = vector.extract_strided_slice %19 {offsets = [8, 0], sizes = [4, 256], strides = [1, 1]} : vector<16x256xf32> to vector<4x256xf32>
    %27 = arith.addf %23, %26 : vector<4x256xf32>
    %28 = vector.extract_strided_slice %18 {offsets = [8, 0], sizes = [4, 256], strides = [1, 1]} : vector<16x256xf32> to vector<4x256xf32>
    %29 = arith.addf %25, %28 : vector<4x256xf32>
    %30 = vector.extract_strided_slice %19 {offsets = [12, 0], sizes = [4, 256], strides = [1, 1]} : vector<16x256xf32> to vector<4x256xf32>
    %31 = arith.addf %27, %30 : vector<4x256xf32>
    %32 = vector.extract_strided_slice %18 {offsets = [12, 0], sizes = [4, 256], strides = [1, 1]} : vector<16x256xf32> to vector<4x256xf32>
    %33 = arith.addf %29, %32 : vector<4x256xf32>
    %cst_10 = arith.constant 9.99999997E-7 : f32
    %34 = vector.broadcast %cst_10 : f32 to vector<4x256xf32>
    %35 = arith.addf %33, %34 : vector<4x256xf32>
    %36 = tpu.reciprocal %35 {approx = true} : vector<4x256xf32> -> vector<4x256xf32>
    %37 = arith.mulf %31, %36 : vector<4x256xf32>
    %38 = tpu.concatenate %37, %1 in 0 : vector<4x256xf32>, vector<4x256xf32> -> vector<8x256xf32>
    %39 = arith.truncf %38 : vector<8x256xf32> to vector<8x256xbf16>
    %c0_11 = arith.constant 0 : index
    %c0_12 = arith.constant 0 : index
    %40 = vector.load %arg6[%c0_11, %c0_12] : memref<32x8xbf16, #tpu.memory_space<vmem>>, vector<32x8xbf16>
    %cst_13 = arith.constant dense<0.000000e+00> : vector<32x256xf32>
    %41 = tpu.matmul %40, %39, %cst_13 {dimension_numbers = #tpu.dot_dimension_numbers<[1], [0], [0], [1], [0, 0, 1, 1], [], []>} : vector<32x8xbf16>, vector<8x256xbf16>, vector<32x256xf32> -> vector<32x256xf32>
    %c0_14 = arith.constant 0 : index
    %c0_15 = arith.constant 0 : index
    %42 = vector.load %arg7[%c0_14, %c0_15] : memref<32x1xf32, #tpu.memory_space<vmem>>, vector<32x1xf32>
    %43 = vector.shape_cast %42 : vector<32x1xf32> to vector<32x1xf32>
    %44 = vector.broadcast %43 : vector<32x1xf32> to vector<32x256xf32>
    %45 = arith.addf %41, %44 : vector<32x256xf32>
    %cst_16 = arith.constant 0.000000e+00 : f32
    %46 = vector.broadcast %cst_16 : f32 to vector<32x256xf32>
    %47 = arith.maximumf %45, %46 : vector<32x256xf32>
    %48 = arith.truncf %47 : vector<32x256xf32> to vector<32x256xbf16>
    %c0_17 = arith.constant 0 : index
    %c0_18 = arith.constant 0 : index
    %c0_19 = arith.constant 0 : index
    %49 = vector.load %arg8[%c0_17, %c0_18, %c0_19] : memref<1x32x256xbf16, #tpu.memory_space<vmem>>, vector<1x32x256xbf16>
    %50 = vector.shape_cast %49 : vector<1x32x256xbf16> to vector<32x256xbf16>
    %51 = vector.shape_cast %48 : vector<32x256xbf16> to vector<1x32x256xbf16>
    tpu.vector_store %arg8[%c0_17, %c0_18, %c0_19], %51 {strides = array<i32>} : memref<1x32x256xbf16, #tpu.memory_space<vmem>>, vector<1x32x256xbf16>,
    return
  }
  func.func @transform_0(%arg0: i32, %arg1: i32) -> (i32, i32, i32) {
    %c0_i32 = arith.constant 0 : i32
    %c0_i32_0 = arith.constant 0 : i32
    return %arg0, %c0_i32, %arg1 : i32, i32, i32
  }
  func.func @transform_1(%arg0: i32, %arg1: i32) -> (i32, i32, i32) {
    %c0_i32 = arith.constant 0 : i32
    %c0_i32_0 = arith.constant 0 : i32
    return %arg0, %c0_i32, %arg1 : i32, i32, i32
  }
  func.func @transform_2(%arg0: i32, %arg1: i32) -> (i32, i32) {
    %c0_i32 = arith.constant 0 : i32
    %c0_i32_0 = arith.constant 0 : i32
    %c0_i32_1 = arith.constant 0 : i32
    return %c0_i32, %c0_i32_0 : i32, i32
  }
  func.func @transform_3(%arg0: i32, %arg1: i32) -> (i32, i32) {
    %c0_i32 = arith.constant 0 : i32
    %c0_i32_0 = arith.constant 0 : i32
    %c0_i32_1 = arith.constant 0 : i32
    return %c0_i32, %c0_i32_0 : i32, i32
  }
  func.func @transform_4(%arg0: i32, %arg1: i32) -> (i32, i32) {
    %c0_i32 = arith.constant 0 : i32
    %c0_i32_0 = arith.constant 0 : i32
    %c0_i32_1 = arith.constant 0 : i32
    return %c0_i32, %c0_i32_0 : i32, i32
  }
  func.func @transform_5(%arg0: i32, %arg1: i32) -> (i32, i32) {
    %c0_i32 = arith.constant 0 : i32
    %c0_i32_0 = arith.constant 0 : i32
    %c0_i32_1 = arith.constant 0 : i32
    return %c0_i32, %c0_i32_0 : i32, i32
  }
  func.func @transform_6(%arg0: i32, %arg1: i32) -> (i32, i32, i32) {
    %c0_i32 = arith.constant 0 : i32
    %c0_i32_0 = arith.constant 0 : i32
    return %arg0, %c0_i32, %arg1 : i32, i32, i32
  }
}

</mosaic_0001>

<bundles_post_ra>
// kernel: tile.6
= control target key start
LH: loop header
LB: loop body
LE: loop exit
PB: predicated region body
PF: predicated region fallthrough
CT: control target
= control target key end

     0   :  { %s22_s0 = inlined_call_operand.vmem [shape: f32[4], index: 0, kind: input, shape index: {}]   ;;  %s23_s1 = inlined_call_operand.vmem [shape: f32[4,4], index: 1, kind: output, shape index: {}]  }
   0x1   :  { %v4_v0 = vld [vmem:[%s22_s0] ss:$0 sm:$0xff] }
   0x2   :  { %5 = vst [vmem:[%s23_s1] sm:$0xf] %v4_v0 }

// kernel: tile.0
= control target key start
LH: loop header
LB: loop body
LE: loop exit
PB: predicated region body
PF: predicated region fallthrough
CT: control target
= control target key end

     0   :  { %s34_s8 = smov 125   ;;  %s35_s9 = smov 126   ;;  %vm7_vm0 = vcmask 7168   ;;  %s61_s0 = inlined_call_operand.vmem [shape: f32[4,4], index: 0, kind: input, shape index: {}]   ;;  %s62_s1 = inlined_call_operand.vmem [shape: f32[16,1], index: 1, kind: output, shape index: {}]  }
   0x1   :  { %v4_v0 = vld [vmem:[%s61_s0] sm:$0xf]  ;;  %s33_s0 = smov 127  }
   0x2   :  { %5 = vst [vmem:[#allocation0] sm:$0xf] %v4_v0 }
   0x9   :  { %v9_v1 = vld [vmem:[#allocation0] sm:$0xf]  }
   0xa   :  { %v21_v2 = vld [vmem:[#allocation0] sm:$0xf]   ;;  %10 = vrot.lane.b32.xlu0 %v9_v1, %s33_s0 }
   0xb   :  { %22 = vrot.lane.b32.xlu1 %v21_v2, %s34_s8  ;;  %v15_v3 = vld [vmem:[#allocation0] sm:$0xf]  }
   0xc   :  { %v6_v4 = vld [vmem:[#allocation0] sm:$0xf]  }
   0xd   :  { %8 = vst.msk [vmem:[%s62_s1] ss:$4 sm:$0xf] %vm7_vm0, %v6_v4  }
  0x12   :  { %16 = vrot.lane.b32.xlu0 %v15_v3, %s35_s9 }
  0x7c   :  { %v11_v5 = vpop.permute.xlu0 %10  }
  0x7d   :  { %v23_v6 = vpop.permute.xlu1 %22   ;;  %27 = vst.msk [vmem:[%s62_s1 + $0x1] ss:$4 sm:$0xf] %vm7_vm0, %v11_v5  }
  0x7e   :  { %29 = vst.msk [vmem:[%s62_s1 + $0x3] ss:$4 sm:$0xf] %vm7_vm0, %v23_v6  }
  0x84   :  { %v17_v7 = vpop.permute.xlu0 %16  }
  0x85   :  { %28 = vst.msk [vmem:[%s62_s1 + $0x2] ss:$4 sm:$0xf] %vm7_vm0, %v17_v7  }

// kernel: _lambda_.1
= control target key start
LH: loop header
LB: loop body
LE: loop exit
PB: predicated region body
PF: predicated region fallthrough
CT: control target
= control target key end

     0   :  { %s911_s21 = smov 0   ;;  %s913_s22 = smov 0   ;;  %s1017_s0 = inlined_call_operand.vmem [shape: f32[2,4,256], index: 0, kind: input, shape index: {}]   ;;  %s1018_s1 = inlined_call_operand.vmem [shape: bf16[2,16,256], index: 1, kind: input, shape index: {}]   ;;  %s1019_s2 = inlined_call_operand.vmem [shape: bf16[16,16], index: 2, kind: input, shape index: {}]   ;;  %s1020_s3 = inlined_call_operand.vmem [shape: f32[16,1], index: 3, kind: input, shape index: {}]   ;;  %s1021_s4 = inlined_call_operand.vmem [shape: bf16[32,8], index: 4, kind: input, shape index: {}]   ;;  %s1022_s5 = inlined_call_operand.vmem [shape: f32[32,1], index: 5, kind: input, shape index: {}]   ;;  %s1023_s6 = inlined_call_operand.vmem [shape: bf16[2,32,256], index: 6, kind: output, shape index: {}]  }
   0x1   :  { %s915_s23 = smov 0  }
   0x2 LB: > { %s28_s24 = sadd.s32 1, %s869_s22  ;;  %p766_p0 = scmp.ge.s32.totalorder %s873_s23, 1  ;;  %s873_s23 = sphi %s915_s23, %s16_s23   ;;  %s869_s22 = sphi %s913_s22, %s1027_s22   ;;  %s865_s21 = sphi %s911_s21, %s1026_s21  }
   0x3   : > { %p30_p1 = scmp.ge.s32.totalorder %s28_s24, 2  ;;  %p250_p2 = scmp.lt.s32.totalorder %s873_s23, 3 }
   0x5   : > { %s1029_s24 = smov (%p30_p1, %s28_s24), 0  ;;  %p251_p3 = pnand %p766_p0, %p250_p2 }
   0x6   : > { %p298_p4 = scmp.lt.s32.totalorder (!%p251_p3), %s865_s21, 1 }
   0x7   : > { %254 = sbr.rel (%p251_p3) target bundleno = 408 (0x198), region = 44 }
   0xc   : > { %s1031_s21 = smov (!%p298_p4, %s865_s21), 1  ;;  %v371_v3 = vld [vmem:[%s1020_s3] sm:$0xff]  ;;  %v875_v4 = vmov 0   ;;  %v372_v5 = vld [vmem:[%s1020_s3 + $0x8] sm:$0xff]  ;;  %vm358_vm0 = vcmask 1043456   ;;  %vm388_vm1 = vcmask 130048  }
   0xd   : > { %s797_s25 = sshll.u32 %s1031_s21, 3  ;;  %828 = vset.pattern.permute.xlu0 %v875_v4  ;;  %829 = vset.pattern.permute.xlu1 %v875_v4  ;;  %s798_s9 = sshll.u32 %s1031_s21, 4  ;;  %v800_v28 = vld [vmem:[%s1019_s2] sm:$0xff] }
   0xe   : > { %s305_s28 = scalar_lea.vmem %s1017_s0, %s797_s25  ;;  %375 = vperm.xlu0 %828, %v371_v3   ;;  %830 = vset.pattern.permute.xlu2 %v875_v4  ;;  %s315_s12 = scalar_lea.vmem %s1018_s1, %s798_s9 }
   0xf   : > { %v328_v0 = vld [vmem:[%s305_s28] sm:$0xff]  ;;  %v947_v11 = vld [vmem:[%s315_s12 + $0x8] sm:$0xff]  ;;  %s799_s7 = sshll.u32 %s1031_s21, 5 }
  0x10   : > { %336 = vst [vmem:[#allocation1] ss:$2 sm:$0xff] %v328_v0  ;;  %v945_v10 = vld [vmem:[%s315_s12] sm:$0xff]  ;;  %v333_v16 = vunpack.c.l.bf16 %v947_v11  ;;  %v334_v17 = vunpack.c.h.bf16 %v947_v11  ;;  %s325_s10 = scalar_lea.vmem %s1023_s6, %s799_s7 }
  0x11   : > { %v331_v12 = vunpack.c.l.bf16 %v945_v10  ;;  %v332_v13 = vunpack.c.h.bf16 %v945_v10 }
  0x16   : > { %380 = vperm.xlu0 %828, %v372_v5  }
  0x17   : > { %v337_v1 = vld.sshfl [vmem:[#allocation1] sm:$0xff pattern:$0x75316420]  ;;  %v338_v2 = vld.sshfl [vmem:[#allocation1 + $0x8] sm:$0xff pattern:$0x75316420] }
  0x18   : > { %342 = vst [vmem:[#allocation1 + $0x1] ss:$2 sm:$0xff] %v328_v0 }
  0x1f   : > { %v343_v6 = vld.sshfl [vmem:[#allocation1] sm:$0xff pattern:$0x75316420]  ;;  %v344_v7 = vld.sshfl [vmem:[#allocation1 + $0x8] sm:$0xff pattern:$0x75316420] }
  0x20   : > { %347 = vst [vmem:[#allocation1] ss:$2 sm:$0xff] %v328_v0  ;;  %v359_v14 = vsel %vm358_vm0, %v337_v1, %v343_v6  ;;  %v360_v15 = vsel %vm358_vm0, %v338_v2, %v344_v7 }
  0x21   : > { %v363_v19 = vsub.f32 %v359_v14, %v331_v12  ;;  %v364_v21 = vsub.f32 %v360_v15, %v332_v13 }
  0x27   : > { %v348_v8 = vld.sshfl [vmem:[#allocation1] sm:$0xff pattern:$0x75316420]  ;;  %v349_v9 = vld.sshfl [vmem:[#allocation1 + $0x8] sm:$0xff pattern:$0x75316420] }
  0x28   : > { %353 = vst [vmem:[#allocation1 + $0x1] ss:$2 sm:$0xff] %v328_v0 }
  0x2f   : > { %v354_v18 = vld.sshfl [vmem:[#allocation1] sm:$0xff pattern:$0x75316420]  ;;  %v355_v20 = vld.sshfl [vmem:[#allocation1 + $0x8] sm:$0xff pattern:$0x75316420] }
  0x30   : > { %v361_v22 = vsel %vm358_vm0, %v348_v8, %v354_v18  ;;  %v362_v23 = vsel %vm358_vm0, %v349_v9, %v355_v20  ;;  %543 = vst [vmem:[#allocation1 + $0x1] ss:$2 sm:$0xff] %v328_v0 }
  0x31   : > { %v365_v24 = vsub.f32 %v361_v22, %v333_v16  ;;  %v366_v25 = vsub.f32 %v362_v23, %v334_v17 }
  0x33   : > { %v367_v26 = vpack.c.bf16 %v365_v24, %v363_v19  ;;  %v368_v27 = vpack.c.bf16 %v366_v25, %v364_v21 }
  0x35   : > { %399 = vmatpush.bf16.msra.mxu0 %v367_v26  ;;  %413 = vmatpush.bf16.msra.mxu1 %v368_v27 }
  0x38   : > { %777 = vmatmul.msk.bf16.vlgmr.msra.gmra.mxu0 %vm388_vm1, %v800_v28  ;;  %778 = vmatmul.msk.bf16.vlgmr.msra.gmra.mxu1 %vm388_vm1, %v800_v28 }
  0x80   : > { %v376_v29 = vpop.permute.xlu0 %375 }
  0x88   : > { %v381_v36 = vpop.permute.xlu0 %380 }
  0xb5   : > { %v401_v30 = vpop.f32.mrf.mxu0  ;;  %v415_v31 = vpop.f32.mrf.mxu1 }
  0xb6   : > { %v402_v32 = vadd.f32 %v401_v30, %v376_v29  ;;  %v416_v33 = vadd.f32 %v415_v31, %v376_v29 }
  0xb8   : > { %v779_v34 = vmul.f32 -1.442695, %v402_v32  ;;  %v780_v35 = vmul.f32 -1.442695, %v416_v33 }
  0xba   : > { %831 = vpow2.f32 %v779_v34 }
  0xbb   : > { %833 = vpow2.f32 %v780_v35 }
  0xbd   : > { %v403_v37 = vpop.f32.mrf.mxu0  ;;  %v417_v38 = vpop.f32.mrf.mxu1 }
  0xbe   : > { %v404_v39 = vadd.f32 %v403_v37, %v381_v36  ;;  %v418_v40 = vadd.f32 %v417_v38, %v381_v36 }
  0xc0   : > { %v832_v41 = vpop.eup %831  ;;  %v781_v42 = vmul.f32 -1.442695, %v404_v39  ;;  %v782_v45 = vmul.f32 -1.442695, %v418_v40 }
  0xc1   : > { %v834_v43 = vpop.eup %833  ;;  %v432_v44 = vadd.f32 1.0, %v832_v41 }
  0xc2   : > { %v433_v46 = vadd.f32 1.0, %v834_v43  ;;  %835 = vpow2.f32 %v781_v42 }
  0xc3   : > { %837 = vrcp.f32 %v432_v44  ;;  %v447_v56 = vand.u32 2147483648, %v432_v44  ;;  %v445_v59 = vand.u32 2147483647, %v432_v44  ;;  %vm441_vm4 = vweird.f32 %v432_v44 }
  0xc4   : > { %839 = vrcp.f32 %v433_v46  ;;  %v462_v62 = vand.u32 2147483648, %v433_v46  ;;  %vm456_vm6 = vweird.f32 %v433_v46  ;;  %v460_v2 = vand.u32 2147483647, %v433_v46 }
  0xc5   : > { %841 = vpow2.f32 %v782_v45  ;;  %v448_v0 = vor.u32 1.1754944e-38, %v447_v56  ;;  %vm446_vm7 = vcmp.eq.f32.partialorder %v445_v59, 8.507059e+37 }
  0xc6   : > { %v463_v9 = vor.u32 1.1754944e-38, %v462_v62  ;;  %vm461_vm9 = vcmp.eq.f32.partialorder %v460_v2, 8.507059e+37  ;;  %v557_v62 = vld [vmem:[%s1022_s5 + $0x8] sm:$0xff] }
  0xc8   : > { %v836_v47 = vpop.eup %835 }
  0xc9   : > { %v838_v48 = vpop.eup %837  ;;  %v434_v49 = vadd.f32 1.0, %v836_v47 }
  0xca   : > { %v840_v50 = vpop.eup %839  ;;  %v437_v51 = vmul.f32 %v838_v48, %v432_v44  ;;  %vm442_vm2 = vweird.f32 %v838_v48 }
  0xcb   : > { %v842_v52 = vpop.eup %841  ;;  %v452_v53 = vmul.f32 %v840_v50, %v433_v46  ;;  %843 = vrcp.f32 %v434_v49  ;;  %vm457_vm3 = vweird.f32 %v840_v50  ;;  %vm443_vm5 = vmor %vm441_vm4, %vm442_vm2  ;;  %v477_v15 = vand.u32 2147483648, %v434_v49 }
  0xcc   : > { %v438_v54 = vsub.f32 1.0, %v437_v51  ;;  %v435_v55 = vadd.f32 1.0, %v842_v52  ;;  %vm968_vm8 = vmor %vm456_vm6, %vm457_vm3  ;;  %v475_v18 = vand.u32 2147483647, %v434_v49  ;;  %vm471_vm11 = vweird.f32 %v434_v49 }
  0xcd   : > { %v453_v57 = vsub.f32 1.0, %v452_v53  ;;  %v478_v25 = vor.u32 1.1754944e-38, %v477_v15  ;;  %v556_v53 = vld [vmem:[%s1022_s5] sm:$0xff]  ;;  %vm590_vm3 = vcmask 64512  }
  0xce   : > { %v439_v58 = vmul.f32 %v838_v48, %v438_v54  ;;  %845 = vrcp.f32 %v435_v55  ;;  %v490_v26 = vand.u32 2147483647, %v435_v55  ;;  %v492_v27 = vand.u32 2147483648, %v435_v55  ;;  %562 = vperm.xlu1 %829, %v556_v53  }
  0xcf   : > { %v454_v60 = vmul.f32 %v840_v50, %v453_v57  ;;  %vm476_vm14 = vcmp.eq.f32.partialorder %v475_v18, 8.507059e+37  ;;  %vm486_vm15 = vweird.f32 %v435_v55 }
  0xd0   : > { %v440_v61 = vadd.f32 %v838_v48, %v439_v58  ;;  %v493_v35 = vor.u32 1.1754944e-38, %v492_v27  ;;  %vm491_vm2 = vcmp.eq.f32.partialorder %v490_v26, 8.507059e+37 }
  0xd1   : > { %v844_v63 = vpop.eup %843  ;;  %v455_v1 = vadd.f32 %v840_v50, %v454_v60 }
  0xd2   : > { %v467_v4 = vmul.f32 %v844_v63, %v434_v49  ;;  %v444_v5 = vsel %vm443_vm5, %v838_v48, %v440_v61  ;;  %vm472_vm10 = vweird.f32 %v844_v63  ;;  %v545_v61 = vld.sshfl [vmem:[#allocation1 + $0x8] sm:$0xff pattern:$0x75316420] }
  0xd3   : > { %v449_v6 = vsel %vm446_vm7, %v448_v0, %v444_v5  ;;  %v459_v7 = vsel %vm968_vm8, %v840_v50, %v455_v1  ;;  %vm473_vm12 = vmor %vm471_vm11, %vm472_vm10 }
  0xd4   : > { %v846_v8 = vpop.eup %845  ;;  %v468_v14 = vsub.f32 1.0, %v467_v4  ;;  %v510_v21 = vrot.slane %v449_v6, 4  ;;  %v464_v22 = vsel %vm461_vm9, %v463_v9, %v459_v7  ;;  %v496_v29 = vmul.f32 %v449_v6, %v331_v12  ;;  %v801_v4 = vld [vmem:[%s1021_s4] sm:$0xff]  ;;  %v802_v7 = vld [vmem:[%s1021_s4 + $0x8] sm:$0xff] }
  0xd5   : > { %v482_v19 = vmul.f32 %v846_v8, %v435_v55  ;;  %vm487_vm13 = vweird.f32 %v846_v8  ;;  %v511_v30 = vrot.slane %v464_v22, 4  ;;  %v497_v38 = vmul.f32 %v464_v22, %v332_v13 }
  0xd6   : > { %v469_v20 = vmul.f32 %v844_v63, %v468_v14  ;;  %v514_v32 = vadd.f32 %v510_v21, %v449_v6  ;;  %vm488_vm1 = vmor %vm486_vm15, %vm487_vm13  ;;  %v502_v39 = vrot.slane %v496_v29, 4  ;;  %567 = vperm.xlu1 %829, %v557_v62  }
  0xd7   : > { %v483_v23 = vsub.f32 1.0, %v482_v19  ;;  %v515_v41 = vadd.f32 %v511_v30, %v464_v22  ;;  %v503_v47 = vrot.slane %v497_v38, 4 }
  0xd8   : > { %v470_v24 = vadd.f32 %v844_v63, %v469_v20  ;;  %v506_v48 = vadd.f32 %v502_v39, %v496_v29 }
  0xd9   : > { %v484_v28 = vmul.f32 %v846_v8, %v483_v23  ;;  %v507_v52 = vadd.f32 %v503_v47, %v497_v38 }
  0xda   : > { %v474_v31 = vsel %vm473_vm12, %v844_v63, %v470_v24  ;;  %v559_v63 = vld [vmem:[%s1022_s5 + $0x18] sm:$0xff] }
  0xdb   : > { %v485_v33 = vadd.f32 %v846_v8, %v484_v28  ;;  %v479_v34 = vsel %vm476_vm14, %v478_v25, %v474_v31 }
  0xdc   : > { %v518_v36 = vadd.f32 %v514_v32, %v479_v34  ;;  %v530_v37 = vrot.slane %v479_v34, 4  ;;  %v498_v43 = vmul.f32 %v479_v34, %v333_v16  ;;  %v558_v16 = vld [vmem:[%s1022_s5 + $0x10] sm:$0xff] }
  0xdd   : > { %v489_v40 = vsel %vm488_vm1, %v846_v8, %v485_v33  ;;  %572 = vperm.xlu2 %830, %v558_v16  }
  0xde   : > { %v534_v42 = vadd.f32 %v530_v37, %v518_v36  ;;  %v494_v12 = vsel %vm491_vm2, %v493_v35, %v489_v40  ;;  %v516_v13 = vadd.f32 %v506_v48, %v498_v43  ;;  %v522_v50 = vrot.slane %v498_v43, 4 }
  0xdf   : > { %v519_v44 = vadd.f32 %v515_v41, %v494_v12  ;;  %v531_v45 = vrot.slane %v494_v12, 4  ;;  %v499_v10 = vmul.f32 %v494_v12, %v334_v17  ;;  %v544_v17 = vld.sshfl [vmem:[#allocation1] sm:$0xff pattern:$0x75316420] }
  0xe0   : > { %v536_v46 = vadd.f32 1e-06, %v534_v42  ;;  %v526_v56 = vadd.f32 %v522_v50, %v516_v13 }
  0xe1   : > { %v535_v49 = vadd.f32 %v531_v45, %v519_v44  ;;  %v517_v54 = vadd.f32 %v507_v52, %v499_v10  ;;  %v523_v55 = vrot.slane %v499_v10, 4 }
  0xe2   : > { %847 = vrcp.f32 %v536_v46 }
  0xe3   : > { %v537_v51 = vadd.f32 1e-06, %v535_v49  ;;  %v527_v58 = vadd.f32 %v523_v55, %v517_v54 }
  0xe5   : > { %849 = vrcp.f32 %v537_v51  ;;  %577 = vperm.xlu2 %830, %v559_v63  }
  0xe8   : > { %v848_v11 = vpop.eup %847 }
  0xe9   : > { %v540_v57 = vmul.f32 %v848_v11, %v526_v56 }
  0xeb   : > { %v850_v59 = vpop.eup %849  ;;  %v548_v60 = vsel %vm358_vm0, %v540_v57, %v544_v17 }
  0xec   : > { %v550_v0 = vpack.c.bf16 %v548_v60, %v548_v60  ;;  %v541_v1 = vmul.f32 %v850_v59, %v527_v58 }
  0xee   : > { %v598_v2 = vsel %vm358_vm0, %v550_v0, 0  ;;  %v549_v3 = vsel %vm358_vm0, %v541_v1, %v545_v61 }
  0xef   : > { %610 = vmatpush.bf16.msra.mxu2 %v598_v2  ;;  %v551_v5 = vpack.c.bf16 %v549_v3, %v549_v3 }
  0xf1   : > { %v601_v6 = vsel %vm358_vm0, %v551_v5, 0 }
  0xf2   : > { %629 = vmatpush.bf16.msra.mxu3 %v601_v6  ;;  %791 = vmatmul.msk.bf16.vlgmr.msra.gmra.mxu2 %vm590_vm3, %v801_v4 }
  0xf5   : > { %793 = vmatmul.msk.bf16.vlgmr.msra.gmra.mxu3 %vm590_vm3, %v801_v4 }
 0x102   : > { %792 = vmatmul.msk.bf16.gmra.mxu2 %vm590_vm3, %v802_v7 }
 0x105   : > { %794 = vmatmul.msk.bf16.gmra.mxu3 %vm590_vm3, %v802_v7 }
 0x137   : > { %v573_v28 = vpop.permute.xlu2 %572 }
 0x13f   : > { %v578_v37 = vpop.permute.xlu2 %577 }
 0x140   : > { %v563_v8 = vpop.permute.xlu1 %562 }
 0x148   : > { %v568_v21 = vpop.permute.xlu1 %567 }
 0x175   : > { %v612_v9 = vpop.f32.mrf.mxu2 }
 0x176   : > { %v613_v14 = vadd.f32 %v612_v9, %v563_v8 }
 0x178   : > { %v631_v15 = vpop.f32.mrf.mxu3  ;;  %v641_v18 = vmax.f32 %v613_v14, 0.0 }
 0x179   : > { %v632_v19 = vadd.f32 %v631_v15, %v563_v8 }
 0x17b   : > { %v642_v20 = vmax.f32 %v632_v19, 0.0 }
 0x17d   : > { %v649_v22 = vpack.c.bf16 %v642_v20, %v641_v18  ;;  %v614_v23 = vpop.f32.mrf.mxu2 }
 0x17e   : > { %v615_v24 = vadd.f32 %v614_v23, %v568_v21 }
 0x17f   : > { %653 = vst [vmem:[%s325_s10] sm:$0xff] %v649_v22 }
 0x180   : > { %v633_v25 = vpop.f32.mrf.mxu3  ;;  %v643_v26 = vmax.f32 %v615_v24, 0.0 }
 0x181   : > { %v634_v27 = vadd.f32 %v633_v25, %v568_v21 }
 0x183   : > { %v644_v29 = vmax.f32 %v634_v27, 0.0 }
 0x185   : > { %v650_v30 = vpack.c.bf16 %v644_v29, %v643_v26  ;;  %v617_v31 = vpop.f32.mrf.mxu2 }
 0x186   : > { %v618_v32 = vadd.f32 %v617_v31, %v573_v28 }
 0x187   : > { %654 = vst [vmem:[%s325_s10 + $0x8] sm:$0xff] %v650_v30 }
 0x188   : > { %v636_v33 = vpop.f32.mrf.mxu3  ;;  %v645_v34 = vmax.f32 %v618_v32, 0.0 }
 0x189   : > { %v637_v35 = vadd.f32 %v636_v33, %v573_v28 }
 0x18b   : > { %v646_v36 = vmax.f32 %v637_v35, 0.0 }
 0x18d   : > { %v651_v38 = vpack.c.bf16 %v646_v36, %v645_v34  ;;  %v619_v39 = vpop.f32.mrf.mxu2 }
 0x18e   : > { %v620_v40 = vadd.f32 %v619_v39, %v578_v37 }
 0x18f   : > { %655 = vst [vmem:[%s325_s10 + $0x10] sm:$0xff] %v651_v38 }
 0x190   : > { %v638_v41 = vpop.f32.mrf.mxu3  ;;  %v647_v42 = vmax.f32 %v620_v40, 0.0 }
 0x191   : > { %v639_v12 = vadd.f32 %v638_v41, %v578_v37 }
 0x193   : > { %v648_v43 = vmax.f32 %v639_v12, 0.0 }
 0x195   : > { %v652_v44 = vpack.c.bf16 %v648_v43, %v647_v42 }
 0x197   : > { %656 = vst [vmem:[%s325_s10 + $0x18] sm:$0xff] %v652_v44 }
 0x198 PF: > { %s16_s23 = sadd.s32 1, %s873_s23   ;;  %s1026_s21 = smov %s869_s22 }
 0x199   : > { %p13_p5 = scmp.ge.s32.totalorder %s16_s23, 4   ;;  %s1027_s22 = smov %s1029_s24 }
 0x19b   :  { %15 = sbr.rel (!%p13_p5) target bundleno = 2 (0x2), region = 80 }

</bundles_post_ra>
